<compile_context>
chip_gen: v6e
topology: v6e:2x2x1
jax: 0.10.0
libtpu: 0.0.40
codegen_flags: <defaults>
</compile_context>

<pallas_src>
import jax
import jax.numpy as jnp
from jax.experimental import pallas as pl
from jax.experimental.pallas import tpu as pltpu


# ------------------------------- kernels ------------------------------------

def _decoder_kernel(x_ref, w_ref, b_ref, o_ref):
    # x_ref: (tm, K) activations; w_ref: (K, tn) weight; b_ref: (1, tn) f32 bias.
    acc = jnp.dot(x_ref[...], w_ref[...], preferred_element_type=jnp.float32)
    o_ref[...] = (acc + b_ref[...]).astype(o_ref.dtype)


def _decoder_kernel_ktiled(x_ref, w_ref, b_ref, o_ref, acc_ref):
    # Same contraction, but with an innermost K ("arbitrary") grid axis and an
    # f32 VMEM accumulator resident across the K sweep.
    k = pl.program_id(2)

    @pl.when(k == 0)
    def _():
        acc_ref[...] = jnp.zeros_like(acc_ref)

    acc_ref[...] += jnp.dot(x_ref[...], w_ref[...],
                            preferred_element_type=jnp.float32)

    @pl.when(k == pl.num_programs(2) - 1)
    def _():
        o_ref[...] = (acc_ref[...] + b_ref[...]).astype(o_ref.dtype)


# ------------------------------- wrapper ------------------------------------

def _vmem_capacity_bytes(default=64 << 20):
    """Per-core VMEM capacity; conservative 64 MiB (v7x-sized) fallback."""
    try:
        cap = getattr(pltpu.get_tpu_info(), "vmem_capacity_bytes", None)
        return int(cap) if cap else int(default)
    except Exception:
        return int(default)


def prepare_decoder_params(weight, bias, compute_dtype=jnp.bfloat16):
    """One-time parameter prep (hoist OUT of the per-step path in a real model):
    transpose nn.Linear's (ntoken, ninp) weight to (ninp, ntoken) and cast it
    once to the MXU compute dtype; bias stays f32 (added post f32 accumulation)."""
    w_t = jnp.asarray(weight).T.astype(compute_dtype)
    b2d = jnp.asarray(bias).astype(jnp.float32).reshape(1, -1)
    return w_t, b2d


def decoder_apply(inp, w_t, b2d, *, tm=1024, tn=1024, tk=None,
                  compute_dtype=jnp.bfloat16, out_dtype=None):
    """inp: (seq, batch, ninp); w_t: (ninp, ntoken); b2d: (1, ntoken) f32.
    Returns (batch, seq, ntoken), matching PyTorch Decoder.forward."""
    seq, batch, ninp = inp.shape
    k_dim, ntoken = w_t.shape
    assert k_dim == ninp and b2d.shape == (1, ntoken)
    M, K, N = batch * seq, ninp, ntoken
    out_dtype = inp.dtype if out_dtype is None else out_dtype

    # Permute only the SMALL activation tensor (ninp << ntoken) so the kernel
    # writes the final batch-major (batch*seq, ntoken) slab directly and the
    # trailing reshape is metadata-only.
    x2d = jnp.transpose(inp, (1, 0, 2)).reshape(M, K).astype(compute_dtype)

    cbytes = jnp.dtype(compute_dtype).itemsize
    obytes = jnp.dtype(out_dtype).itemsize

    # Clamp tiles to full dims for small problems (each block dim is then either
    # a multiple of (8, 128) or equal to the full array dim -> always legal).
    tm = int(min(tm, M))
    tn = int(min(tn, N))

    vmem_cap = _vmem_capacity_bytes()
    budget = vmem_cap - (8 << 20)          # compiler-scratch headroom

    def working_set(tm_, tn_, tk_):
        acc = tm_ * tn_ * 4 if tk_ < K else 0          # f32 accumulator if K-tiled
        dbl = 2 * (tm_ * tk_ * cbytes + tk_ * tn_ * cbytes + tn_ * 4
                   + tm_ * tn_ * obytes)               # double-buffered in/out
        return dbl + acc + (2 << 20)

    # K tiling: keep full K resident unless it blows the VMEM budget; then pick a
    # tk that is a multiple of 128 AND divides K exactly (no padded garbage in the
    # accumulation), which keeps tm/tn -- the HBM-traffic levers -- large.
    if tk is None:
        tk = K
        if working_set(tm, tn, K) > budget:
            for cand in (4096, 2048, 1024, 512, 256, 128):
                if cand < K and K % cand == 0 and working_set(tm, tn, cand) <= budget:
                    tk = cand
                    break
    else:
        tk = int(min(tk, K))
        assert tk == K or (tk % 128 == 0 and K % tk == 0), \
            "explicit tk must be a multiple of 128 that divides ninp"

    # Last resort: shrink the output tile (vocab dim first, then rows).
    while working_set(tm, tn, tk) > budget and tn > 256:
        tn = max(256, tn // 2)
    while working_set(tm, tn, tk) > budget and tm > 256:
        tm = max(256, tm // 2)

    nm, nn, nk = pl.cdiv(M, tm), pl.cdiv(N, tn), pl.cdiv(K, tk)

    # HBM traffic: x streamed once, weight + bias re-streamed once per M tile,
    # output written once (reflects the actual re-stream count for scheduling).
    cost = pl.CostEstimate(
        flops=2 * M * K * N,
        transcendentals=0,
        bytes_accessed=(M * K * cbytes + nm * (N * K * cbytes + N * 4)
                        + M * N * obytes),
    )

    vmem_limit = int(min(max(working_set(tm, tn, tk) + (4 << 20), 16 << 20),
                         vmem_cap - (4 << 20)))

    if nk == 1:
        grid = (nm, nn)                 # M outer, vocab inner: x tile resident
        kernel = _decoder_kernel
        in_specs = [
            pl.BlockSpec((tm, K), lambda i, j: (i, 0)),    # activations (resident)
            pl.BlockSpec((K, tn), lambda i, j: (0, j)),    # weight (streamed)
            pl.BlockSpec((1, tn), lambda i, j: (0, j)),    # bias
        ]
        out_specs = pl.BlockSpec((tm, tn), lambda i, j: (i, j))
        scratch_shapes = []
        dims = ("parallel", "parallel")
    else:
        grid = (nm, nn, nk)             # reduction axis innermost
        kernel = _decoder_kernel_ktiled
        in_specs = [
            pl.BlockSpec((tm, tk), lambda i, j, k: (i, k)),
            pl.BlockSpec((tk, tn), lambda i, j, k: (k, j)),
            pl.BlockSpec((1, tn), lambda i, j, k: (0, j)),
        ]
        out_specs = pl.BlockSpec((tm, tn), lambda i, j, k: (i, j))
        scratch_shapes = [pltpu.VMEM((tm, tn), jnp.float32)]
        dims = ("parallel", "parallel", "arbitrary")

    out2d = pl.pallas_call(
        kernel,
        out_shape=jax.ShapeDtypeStruct((M, N), out_dtype),
        grid_spec=pltpu.PrefetchScalarGridSpec(
            num_scalar_prefetch=0,
            grid=grid,
            in_specs=in_specs,
            out_specs=out_specs,
            scratch_shapes=scratch_shapes,
        ),
        compiler_params=pltpu.CompilerParams(
            dimension_semantics=dims,
            vmem_limit_bytes=vmem_limit,
        ),
        cost_estimate=cost,
    )(x2d, w_t, b2d)

    # Rows are already batch-major -> metadata-only reshape.
    return out2d.reshape(batch, seq, N)


def decoder_forward(inp, weight, bias, *, tm=1024, tn=1024, tk=None,
                    compute_dtype=jnp.bfloat16, out_dtype=None):
    """Convenience entry matching the PyTorch module exactly:
    inp (seq, batch, ninp), weight (ntoken, ninp), bias (ntoken,)
    -> (batch, seq, ntoken)."""
    w_t, b2d = prepare_decoder_params(weight, bias, compute_dtype)
    return decoder_apply(inp, w_t, b2d, tm=tm, tn=tn, tk=tk,
                         compute_dtype=compute_dtype, out_dtype=out_dtype)


def _reference(inp, weight, bias):
    return (jnp.einsum("sbi,oi->sbo", inp, weight) + bias).transpose(1, 0, 2)


if __name__ == "__main__":
    key = jax.random.PRNGKey(0)
    k1, k2, k3, k4, k5, k6 = jax.random.split(key, 6)
    initrange = 0.1

    # --- 1) Small module-consistent shapes, exact f32 compute path ----------
    seq, batch, ninp, ntoken = 8, 2, 32, 16
    inp = jax.random.normal(k1, (seq, batch, ninp), dtype=jnp.float32)
    # nn.Linear init per init_weights(): weight ~ U(-0.1, 0.1), bias = 0.
    weight = jax.random.uniform(k2, (ntoken, ninp), dtype=jnp.float32,
                                minval=-initrange, maxval=initrange)
    bias = jnp.zeros((ntoken,), dtype=jnp.float32)

    out = jax.block_until_ready(
        decoder_forward(inp, weight, bias, compute_dtype=jnp.float32))
    ref = _reference(inp, weight, bias)
    assert out.shape == (batch, seq, ntoken)
    assert jnp.allclose(out, ref, atol=1e-5, rtol=1e-5)

    # --- 2) Multi-tile grid, default bf16 compute / f32 accumulate ----------
    seq2, batch2, ninp2, ntoken2 = 48, 4, 128, 384
    inp2 = jax.random.normal(k3, (seq2, batch2, ninp2), dtype=jnp.float32)
    weight2 = jax.random.uniform(k4, (ntoken2, ninp2), dtype=jnp.float32,
                                 minval=-initrange, maxval=initrange)
    bias2 = jax.random.uniform(k5, (ntoken2,), dtype=jnp.float32,
                               minval=-initrange, maxval=initrange)

    out2 = jax.block_until_ready(
        decoder_forward(inp2, weight2, bias2, tm=64, tn=128))    # grid (3, 3)
    ref2 = _reference(inp2, weight2, bias2)
    assert out2.shape == (batch2, seq2, ntoken2)
    # bf16 inputs / f32 accumulation vs. full-f32 reference.
    assert jnp.allclose(out2, ref2, atol=3e-2, rtol=3e-2)
    # Tight check vs. a reference quantized the same way (bf16 in, f32 accum).
    ref2_q = (jnp.einsum("sbi,oi->sbo",
                         inp2.astype(jnp.bfloat16).astype(jnp.float32),
                         weight2.astype(jnp.bfloat16).astype(jnp.float32))
              + bias2).transpose(1, 0, 2)
    assert jnp.allclose(out2, ref2_q, atol=1e-4, rtol=1e-4)

    # --- 3) K-tiled accumulator path (forced small tk), exact f32 -----------
    seq3, batch3, ninp3, ntoken3 = 16, 4, 256, 256
    inp3 = jax.random.normal(k6, (seq3, batch3, ninp3), dtype=jnp.float32)
    weight3 = jax.random.uniform(jax.random.PRNGKey(11), (ntoken3, ninp3),
                                 dtype=jnp.float32,
                                 minval=-initrange, maxval=initrange)
    bias3 = jax.random.uniform(jax.random.PRNGKey(12), (ntoken3,),
                               dtype=jnp.float32,
                               minval=-initrange, maxval=initrange)

    out3 = jax.block_until_ready(
        decoder_forward(inp3, weight3, bias3, tm=64, tn=128, tk=128,
                        compute_dtype=jnp.float32))              # grid (1, 2, 2)
    ref3 = _reference(inp3, weight3, bias3)
    assert out3.shape == (batch3, seq3, ntoken3)
    assert jnp.allclose(out3, ref3, atol=1e-4, rtol=1e-4)

    print("KERNEL_OK")
</pallas_src>

<mosaic_0001>
module attributes {stable_mosaic.version = 11 : i64} {
  func.func @_decoder_kernel(%arg0: i32, %arg1: i32, %arg2: memref<16x32xf32, #tpu.memory_space<vmem>>, %arg3: memref<32x16xf32, #tpu.memory_space<vmem>>, %arg4: memref<1x16xf32, #tpu.memory_space<vmem>>, %arg5: memref<16x16xf32, #tpu.memory_space<vmem>>) attributes {dimension_semantics = [#tpu.dimension_semantics<parallel>, #tpu.dimension_semantics<parallel>], iteration_bounds = array<i64: 1, 1>, scalar_prefetch = 0 : i64, scratch_operands = 0 : i64, tpu.core_type = #tpu.core_type<tc>, window_params = [{transform_indices = @transform_0, window_bounds = array<i64: 16, 32>}, {transform_indices = @transform_1, window_bounds = array<i64: 32, 16>}, {transform_indices = @transform_2, window_bounds = array<i64: 1, 16>}, {transform_indices = @transform_3, window_bounds = array<i64: 16, 16>}]} {
    %c0 = arith.constant 0 : index
    %c0_0 = arith.constant 0 : index
    %0 = vector.load %arg2[%c0, %c0_0] : memref<16x32xf32, #tpu.memory_space<vmem>>, vector<16x32xf32>
    %c0_1 = arith.constant 0 : index
    %c0_2 = arith.constant 0 : index
    %1 = vector.load %arg3[%c0_1, %c0_2] : memref<32x16xf32, #tpu.memory_space<vmem>>, vector<32x16xf32>
    %cst = arith.constant dense<0.000000e+00> : vector<16x16xf32>
    %2 = tpu.matmul %0, %1, %cst {dimension_numbers = #tpu.dot_dimension_numbers<[1], [0], [0], [1], [0, 0, 1, 1], [], []>} : vector<16x32xf32>, vector<32x16xf32>, vector<16x16xf32> -> vector<16x16xf32>
    %c0_3 = arith.constant 0 : index
    %c0_4 = arith.constant 0 : index
    %3 = vector.load %arg4[%c0_3, %c0_4] : memref<1x16xf32, #tpu.memory_space<vmem>>, vector<1x16xf32>
    %4 = vector.broadcast %3 : vector<1x16xf32> to vector<16x16xf32>
    %5 = arith.addf %2, %4 : vector<16x16xf32>
    %c0_5 = arith.constant 0 : index
    %c0_6 = arith.constant 0 : index
    %6 = vector.load %arg5[%c0_5, %c0_6] : memref<16x16xf32, #tpu.memory_space<vmem>>, vector<16x16xf32>
    tpu.vector_store %arg5[%c0_5, %c0_6], %5 {strides = array<i32>} : memref<16x16xf32, #tpu.memory_space<vmem>>, vector<16x16xf32>,
    return
  }
  func.func @transform_0(%arg0: i32, %arg1: i32) -> (i32, i32) {
    %c0_i32 = arith.constant 0 : i32
    %c0_i32_0 = arith.constant 0 : i32
    return %arg0, %c0_i32 : i32, i32
  }
  func.func @transform_1(%arg0: i32, %arg1: i32) -> (i32, i32) {
    %c0_i32 = arith.constant 0 : i32
    %c0_i32_0 = arith.constant 0 : i32
    return %c0_i32, %arg1 : i32, i32
  }
  func.func @transform_2(%arg0: i32, %arg1: i32) -> (i32, i32) {
    %c0_i32 = arith.constant 0 : i32
    %c0_i32_0 = arith.constant 0 : i32
    return %c0_i32, %arg1 : i32, i32
  }
  func.func @transform_3(%arg0: i32, %arg1: i32) -> (i32, i32) {
    %c0_i32 = arith.constant 0 : i32
    return %arg0, %arg1 : i32, i32
  }
}

</mosaic_0001>

<bundles_post_ra>
// kernel: tpu_custom_call.1
= control target key start
LH: loop header
LB: loop body
LE: loop exit
PB: predicated region body
PF: predicated region fallthrough
CT: control target
= control target key end

     0   :  { %vm28_vm0 = vcmask 261120   ;;  %s221_s0 = inlined_call_operand.vmem [shape: f32[16,32], index: 0, kind: input, shape index: {}]   ;;  %s222_s1 = inlined_call_operand.vmem [shape: f32[32,16], index: 1, kind: input, shape index: {}]   ;;  %s223_s2 = inlined_call_operand.vmem [shape: f32[1,16], index: 2, kind: input, shape index: {}]   ;;  %s224_s3 = inlined_call_operand.hbm [shape: f32[16,16], index: 3, kind: output, shape index: {}]  }
   0x1   :  { %v20_v0 = vld [vmem:[%s222_s1 + $0x18] sm:$0xff]  ;;  %v19_v1 = vld [vmem:[%s222_s1 + $0x10] sm:$0xff]  ;;  %v15_v2 = vld [vmem:[%s221_s0] sm:$0xff] }
   0x2   :  { %138 = vmatprep.subr.mxu0 %v20_v0  ;;  %v18_v3 = vld [vmem:[%s222_s1 + $0x8] sm:$0xff]  ;;  %146 = vmatprep.mubr.msk.f32.mxu0 %vm28_vm0, %v15_v2 }
   0x3   :  { %139 = vmatpush3.msra.mxu0 %v20_v0 }
   0x4   :  { %8 = vsyncpa [#allocation3], 0  ;;  %140 = vmatprep.subr.mxu0 %v19_v1  ;;  %v17_v4 = vld [vmem:[%s222_s1] sm:$0xff]  ;;  %v16_v5 = vld [vmem:[%s221_s0 + $0x8] sm:$0xff]  ;;  %s174_s26 = smov [#allocation2]   ;;  %vm110_vm1 = vcmask 130048  }
   0x5   :  { %141 = vmatpush3.msra.mxu0 %v19_v1  ;;  %v129_v6 = vld [vmem:[%s223_s2] ss:$0 sm:$0xff]  ;;  %s118_s27 = sshll.u32 %s174_s26, 4  ;;  %s119_s27 = int_to_ptr.vmem [resolvable:$true] %s118_s27 }
   0x6   :  { %142 = vmatprep.subr.mxu0 %v18_v3  ;;  %s152_s1 = scalar_lea.vmem %s119_s27, 256  ;;  %p157_p1 = scmp.lt.s32.totalorder %s119_s27, %s119_s27 }
   0x7   :  { %143 = vmatpush3.msra.mxu0 %v18_v3  ;;  %p153_p0 = scmp.ne.s32.totalorder %s119_s27, %s152_s1  ;;  %p158_p2 = scmp.lt.s32.totalorder %s152_s1, %s152_s1 }
   0x8   :  { %144 = vmatprep.subr.mxu0 %v17_v4 }
   0x9   :  { %145 = vmatpush3.msra.mxu0 %v17_v4  ;;  %p159_p3 = por %p158_p2, %p157_p1 }
   0xa   :  { %147 = vmatmul.mubr.msk.f32.vlgmr.msra.gmra.mxu0 %vm28_vm0, %v16_v5 }
   0xb   :  { %p160_p4 = pnand %p159_p3, %p153_p0 }
  0xca   :  { %v148_v7 = vpop.f32.mrf.mxu0 }
  0xcb   :  { %v107_v8 = vadd.f32 %v148_v7, %v129_v6 }
  0xcc   :  { %v101_v9 = vpop.f32.mrf.mxu0 }
  0xcd   :  { %112 = vst.msk [vmem:[#allocation2 + $0x8] sm:$0xff] %vm110_vm1, %v107_v8  ;;  %v102_v10 = vadd.f32 %v129_v6, %v101_v9 }
  0xcf   :  { %111 = vst.msk [vmem:[#allocation2] sm:$0xff] %vm110_vm1, %v102_v10 }
  0xd0   :  { %163 = shalt.err (!%p160_p4)
}
  0xd1   :  { %s175_s0 = smov 128   ;;  %s176_s28 = smov 8  }
  0xd2   :  { %124 = dma.vmem_to_hbm [thread:$0]  %s119_s27, 256, %s224_s3, [#allocation3], %s175_s0, %s175_s0, %s176_s28  }
  0xd3   :  { %172 = dma.done.wait [#allocation3], 256  }
  0xd4   :  { %173 = vsyncadd [#allocation3], 4294967040 }
  0xd5   :  { %128 = vsyncpa [#allocation3], 1 }

</bundles_post_ra>
